<compile_context>
chip_gen: v7x
topology: tpu7x:2x2x1
jax: 0.10.0
libtpu: 0.0.40
codegen_flags: <defaults>
</compile_context>

<pallas_src>
import functools
import math

import numpy as np
import jax
import jax.numpy as jnp
from jax.experimental import pallas as pl
from jax.experimental.pallas import tpu as pltpu


# ----------------------------- Pallas kernel --------------------------------

def _vision_rope_kernel(aux_ref, out_ref, *, block_rows, group):
    """Compute one (block_rows, W) tile of the lane-densified freqs slab.

    aux_ref[0, :] : inv_freq tiled `group` times                  (W,)
    aux_ref[1, :] : per-lane sub-row offset (= lane // half_dim)  (W,)
    out[r, l] = (base + r*group + sub_row[l]) * inv_freq[l]
    """
    aux = aux_ref[...]                         # (2, W), lane-full
    inv_freq = aux[0:1, :]                     # (1, W)
    sub_row = aux[1:2, :]                      # (1, W)

    base = (pl.program_id(0) * (block_rows * group)).astype(jnp.float32)
    # int32 iota -> f32 cast: exact for positions < 2^24 (~16.7M).
    row = jax.lax.broadcasted_iota(jnp.int32, out_ref.shape, 0).astype(jnp.float32)
    pos = base + row * float(group) + sub_row                  # (block_rows, W)
    out_ref[...] = pos * inv_freq


# ----------------------------- wrapper / tiling -------------------------------

def _lane_dense_group(half_dim: int) -> int:
    """Smallest G such that G*half_dim is a multiple of 128 (the vreg lane width)."""
    return 128 // math.gcd(half_dim, 128)


def _choose_block_rows(num_rows: int, width: int, target_bytes: int) -> int:
    """Sublane tile size (multiple of 8) giving ~target_bytes per grid step."""
    rows = max(8, ((target_bytes // (width * 4)) // 8) * 8)
    if num_rows <= rows:
        if num_rows >= 16:
            # Keep >= 2 grid steps so the "parallel" axis can use both v7x TensorCores.
            rows = max(8, ((-(-num_rows // 2) + 7) // 8) * 8)
        else:
            rows = num_rows  # single tile; block dim == full array dim is allowed
    return rows


def vision_rotary_embedding(seqlen: int, inv_freq: jax.Array,
                            *, target_tile_bytes: int = 2 << 20) -> jax.Array:
    """freqs[s, j] = s * inv_freq[j], shape [seqlen, dim//2], float32."""
    half_dim = int(inv_freq.shape[-1])
    group = _lane_dense_group(half_dim)
    width = group * half_dim                       # multiple of 128 -> unmasked stores

    seq_pad = -(-seqlen // group) * group          # pad seqlen to a multiple of G
    num_rows = seq_pad // group                    # rows of the widened slab
    block_rows = _choose_block_rows(num_rows, width, target_tile_bytes)
    grid = (pl.cdiv(num_rows, block_rows),)

    inv_freq_f32 = inv_freq.astype(jnp.float32)
    aux = jnp.stack([
        jnp.tile(inv_freq_f32, group),                               # tiled inv_freq
        jnp.repeat(jnp.arange(group, dtype=jnp.float32), half_dim),  # lane // half_dim
    ])                                                               # (2, width)

    wide = pl.pallas_call(
        functools.partial(_vision_rope_kernel, block_rows=block_rows, group=group),
        out_shape=jax.ShapeDtypeStruct((num_rows, width), jnp.float32),
        grid=grid,
        in_specs=[
            # Same tiny lane-full row pair for every grid step (stays resident in VMEM).
            pl.BlockSpec((2, width), lambda i: (0, 0)),
        ],
        out_specs=pl.BlockSpec((block_rows, width), lambda i: (i, 0)),
        compiler_params=pltpu.CompilerParams(
            dimension_semantics=("parallel",),     # megacore sharding on v7x
        ),
    )(aux)

    # Free row-major view back to the module's layout, then drop padded rows.
    freqs = wide.reshape(seq_pad, half_dim)
    if seq_pad != seqlen:
        freqs = freqs[:seqlen]
    return freqs


# ----------------------------- module wrapper --------------------------------

class Qwen25VisionRotaryEmbedding:
    """JAX/Pallas equivalent of the PyTorch Qwen2_5_VisionRotaryEmbedding module."""

    def __init__(self, dim: int, theta: float = 10000.0):
        self.dim = dim
        self.theta = theta
        # Registered-buffer equivalent (always float32, as the module enforces).
        self.inv_freq = 1.0 / (
            theta ** (jnp.arange(0, dim, 2, dtype=jnp.float32) / dim)
        )

    def __call__(self, seqlen: int) -> jax.Array:
        # TODO(synk): downstream cat(freqs, freqs) + cos/sin could be fused here to
        # halve RoPE-table HBM traffic, but that changes the module boundary.
        return vision_rotary_embedding(seqlen, self.inv_freq)


# ----------------------------------- main ------------------------------------

if __name__ == "__main__":
    _ = jax.random.PRNGKey(0)  # the module's forward consumes only an integer seqlen

    # Small shapes: dim=32 -> half_dim=16, short sequence.
    dim, seqlen = 32, 16
    rope = Qwen25VisionRotaryEmbedding(dim=dim, theta=10000.0)

    freqs = rope(seqlen)
    jax.block_until_ready(freqs)
    assert freqs.shape == (seqlen, dim // 2)
    ref = jnp.outer(jnp.arange(seqlen, dtype=jnp.float32), rope.inv_freq)
    np.testing.assert_allclose(np.asarray(freqs), np.asarray(ref), rtol=1e-6, atol=1e-6)

    # Tiled path: multiple grid steps, partial (masked) last row tile.
    seqlen_big = 1000
    freqs_big = rope(seqlen_big)
    jax.block_until_ready(freqs_big)
    ref_big = jnp.outer(jnp.arange(seqlen_big, dtype=jnp.float32), rope.inv_freq)
    np.testing.assert_allclose(np.asarray(freqs_big), np.asarray(ref_big),
                               rtol=1e-6, atol=1e-6)

    # Realistic Qwen2.5-VL vision head (dim=80 -> half_dim=40): exercises G=16
    # lane-densification plus seqlen padding/slicing.
    rope80 = Qwen25VisionRotaryEmbedding(dim=80, theta=10000.0)
    seqlen_odd = 1000
    freqs80 = rope80(seqlen_odd)
    jax.block_until_ready(freqs80)
    assert freqs80.shape == (seqlen_odd, 40)
    ref80 = jnp.outer(jnp.arange(seqlen_odd, dtype=jnp.float32), rope80.inv_freq)
    np.testing.assert_allclose(np.asarray(freqs80), np.asarray(ref80),
                               rtol=1e-6, atol=1e-6)

    print("KERNEL_OK")
</pallas_src>

<mosaic_0001>
module attributes {stable_mosaic.version = 11 : i64} {
  func.func @_vision_rope_kernel(%arg0: i32, %arg1: memref<2x128xf32, #tpu.memory_space<vmem>>, %arg2: memref<2x128xf32, #tpu.memory_space<vmem>>) attributes {dimension_semantics = [#tpu.dimension_semantics<parallel>], iteration_bounds = array<i64: 1>, scalar_prefetch = 0 : i64, scratch_operands = 0 : i64, tpu.core_type = #tpu.core_type<tc>, window_params = [{pipeline_mode = #tpu.pipeline_mode<synchronous>, transform_indices = @transform_0, window_bounds = array<i64: 2, 128>}, {transform_indices = @transform_1, window_bounds = array<i64: 2, 128>}]} {
    %c0 = arith.constant 0 : index
    %c0_0 = arith.constant 0 : index
    %0 = vector.load %arg1[%c0, %c0_0] : memref<2x128xf32, #tpu.memory_space<vmem>>, vector<2x128xf32>
    %1 = vector.extract_strided_slice %0 {offsets = [0, 0], sizes = [1, 128], strides = [1, 1]} : vector<2x128xf32> to vector<1x128xf32>
    %2 = vector.extract_strided_slice %0 {offsets = [1, 0], sizes = [1, 128], strides = [1, 1]} : vector<2x128xf32> to vector<1x128xf32>
    %c16_i32 = arith.constant 16 : i32
    %3 = arith.muli %arg0, %c16_i32 : i32
    %4 = arith.sitofp %3 : i32 to f32
    %5 = tpu.iota {dimensions = array<i32: 0>} : vector<2x128xi32>
    %6 = arith.sitofp %5 : vector<2x128xi32> to vector<2x128xf32>
    %cst = arith.constant 8.000000e+00 : f32
    %7 = vector.broadcast %cst : f32 to vector<2x128xf32>
    %8 = arith.mulf %6, %7 : vector<2x128xf32>
    %9 = vector.broadcast %4 : f32 to vector<2x128xf32>
    %10 = arith.addf %9, %8 : vector<2x128xf32>
    %11 = vector.broadcast %2 : vector<1x128xf32> to vector<2x128xf32>
    %12 = arith.addf %10, %11 : vector<2x128xf32>
    %13 = vector.broadcast %1 : vector<1x128xf32> to vector<2x128xf32>
    %14 = arith.mulf %12, %13 : vector<2x128xf32>
    %c0_1 = arith.constant 0 : index
    %c0_2 = arith.constant 0 : index
    %15 = vector.load %arg2[%c0_1, %c0_2] : memref<2x128xf32, #tpu.memory_space<vmem>>, vector<2x128xf32>
    tpu.vector_store %arg2[%c0_1, %c0_2], %14 {strides = array<i32>} : memref<2x128xf32, #tpu.memory_space<vmem>>, vector<2x128xf32>,
    return
  }
  func.func @transform_0(%arg0: i32) -> (i32, i32) {
    %c0_i32 = arith.constant 0 : i32
    %c0_i32_0 = arith.constant 0 : i32
    %c0_i32_1 = arith.constant 0 : i32
    return %c0_i32, %c0_i32_0 : i32, i32
  }
  func.func @transform_1(%arg0: i32) -> (i32, i32) {
    %c0_i32 = arith.constant 0 : i32
    %c0_i32_0 = arith.constant 0 : i32
    return %arg0, %c0_i32 : i32, i32
  }
}

</mosaic_0001>

<bundles_post_ra>
// kernel: tpu_custom_call.1
= control target key start
LH: loop header
LB: loop body
LE: loop exit
PB: predicated region body
PF: predicated region fallthrough
CT: control target
= control target key end

     0   :  { %6 = vsyncpa [#allocation3], 0  ;;  %s142_s0 = inlined_call_operand.hbm [shape: f32[2,128], index: 0, kind: input, shape index: {}]   ;;  %s143_s1 = inlined_call_operand.hbm [shape: f32[2,128], index: 1, kind: output, shape index: {}]  }
   0x1   :  { %7 = vsyncpa [#allocation4], 0  ;;  %s106_s6 = smov [#allocation2]   ;;  %s58_s10 = scalar_lea.hbm %s142_s0, 32 }
   0x2   :  { %s14_s7 = sshll.u32 %s106_s6, 4  ;;  %p59_p0 = scmp.ne.s32.totalorder %s142_s0, %s58_s10  ;;  %s15_s7 = int_to_ptr.vmem [resolvable:$true] %s14_s7 }
   0x3   :  { %p62_p1 = scmp.lt.u32.totalorder %s58_s10, %s142_s0 }
   0x5   :  { %p64_p2 = pnand %p62_p1, %p59_p0 }
   0x7   :  { %67 = shalt.err (!%p64_p2)
}
   0x8   :  { %s68_s15 = scalar_lea.vmem %s15_s7, 32  ;;  %p73_p4 = scmp.lt.s32.totalorder %s15_s7, %s15_s7 }
   0x9   :  { %p69_p3 = scmp.ne.s32.totalorder %s15_s7, %s68_s15  ;;  %p74_p5 = scmp.lt.s32.totalorder %s68_s15, %s68_s15 }
   0xb   :  { %p75_p6 = por %p74_p5, %p73_p4 }
   0xd   :  { %p76_p7 = pnand %p75_p6, %p69_p3 }
   0xf   :  { %79 = shalt.err (!%p76_p7)
}
  0x10   :  { %17 = dma.hbm_to_vmem [thread:$0]  %s142_s0, 32, %s15_s7, [#allocation3]  }
  0x11   :  { %102 = dma.done.wait [#allocation3], 32  }
  0x12   :  { %103 = vsyncadd [#allocation3], 4294967264  ;;  %v24_v0 = vlaneseq  ;;  %v21_v6 = vld [vmem:[#allocation2] sm:$0x3]  ;;  %s107_s18 = smov [#allocation5]  }
  0x13   :  { %s47_s19 = sshll.u32 %s107_s18, 4  ;;  %s48_s19 = int_to_ptr.vmem [resolvable:$true] %s47_s19 }
  0x14   :  { %v25_v1 = vshrl.u32 %v24_v0, 7  ;;  %s80_s20 = scalar_lea.vmem %s48_s19, 32  ;;  %p85_p9 = scmp.lt.s32.totalorder %s48_s19, %s48_s19 }
  0x15   :  { %p81_p8 = scmp.ne.s32.totalorder %s48_s19, %s80_s20  ;;  %p86_p10 = scmp.lt.s32.totalorder %s80_s20, %s80_s20 }
  0x16   :  { %v26_v2 = vcvt.s32.f32 %v25_v1  ;;  %v32_v3 = vsub.s32 1, %v25_v1  ;;  %v37_v4 = vsub.s32 0, %v25_v1 }
  0x17   :  { %p87_p11 = por %p86_p10, %p85_p9 }
  0x18   :  { %v27_v5 = vmul.f32 8.0, %v26_v2  ;;  %v33_v7 = vrot.slane %v21_v6, %v32_v3  ;;  %v38_v8 = vrot.slane %v21_v6, %v37_v4 }
  0x19   :  { %p88_p12 = pnand %p87_p11, %p81_p8 }
  0x1a   :  { %v34_v9 = vadd.f32 %v33_v7, %v27_v5 }
  0x1c   :  { %v39_v10 = vmul.f32 %v38_v8, %v34_v9 }
  0x1e   :  { %40 = vst [vmem:[#allocation5] sm:$0x3] %v39_v10 }
  0x1f   :  { %91 = shalt.err (!%p88_p12)
}
  0x20   :  { %s92_s22 = scalar_lea.hbm %s143_s1, 32 }
  0x21   :  { %p93_p13 = scmp.ne.s32.totalorder %s143_s1, %s92_s22  ;;  %p96_p0 = scmp.lt.u32.totalorder %s92_s22, %s143_s1 }
  0x23   :  { %p98_p1 = pnand %p96_p0, %p93_p13 }
  0x25   :  { %101 = shalt.err (!%p98_p1)
}
  0x26   :  { %50 = dma.vmem_to_hbm [thread:$0]  %s48_s19, 32, %s143_s1, [#allocation4]  }
  0x27   :  { %104 = dma.done.wait [#allocation4], 32  }
  0x28   :  { %105 = vsyncadd [#allocation4], 4294967264 }
  0x29   :  { %54 = vsyncpa [#allocation3], 1 }
  0x2a   :  { %55 = vsyncpa [#allocation4], 1 }

</bundles_post_ra>
